<compile_context>
chip_gen: v6e
topology: v6e:2x2x1
jax: 0.10.0
libtpu: 0.0.40
codegen_flags: <defaults>
</compile_context>

<pallas_src>
import functools
import math

import jax
import jax.numpy as jnp
from jax.experimental import pallas as pl
from jax.experimental.pallas import tpu as pltpu


def _round_up(x, m):
    return ((x + m - 1) // m) * m


# ----------------------------------------------------------------------------
# Pallas kernel: o^T tile = act( W_fold (tn,K) @ A (K,tm) + bias (tn,1) )
# ----------------------------------------------------------------------------
def _focus_conv_kernel(a_ref, w_ref, b_ref, o_ref, *, act):
    acc = jnp.dot(w_ref[...], a_ref[...], preferred_element_type=jnp.float32)
    acc = acc + b_ref[...]                       # (tn, 1) broadcasts across lanes (f32)
    if act == "silu":
        acc = acc * jax.nn.sigmoid(acc)          # f32 epilogue (v5e has no bf16 VPU/EUP)
    o_ref[...] = acc                             # f32 store, no N-padding amplification


def conv1x1_t(a, w_pad, b_pad, act="silu"):
    """a: (B, K, M) bf16, w_pad: (c2p, K) bf16, b_pad: (c2p, 1) f32 -> (B, c2p, M) f32."""
    B, K, M = a.shape
    c2p, Kw = w_pad.shape
    assert Kw == K and c2p % 8 == 0

    # Channel tile (sublanes): full c2p unless it is very large.
    tn = c2p if c2p <= 512 else 512
    # Pixel tile (lanes): big (up to 4096) but keep double-buffered f32 output <= ~8 MiB.
    tm_cap = min(4096, max(512, ((4 << 20) // (tn * 4)) // 128 * 128))
    tm = M if M <= tm_cap else tm_cap            # full-dim block, or a multiple of 128
    grid = (B, pl.cdiv(c2p, tn), pl.cdiv(M, tm))  # cdiv: partial edge blocks, no jnp.pad

    return pl.pallas_call(
        functools.partial(_focus_conv_kernel, act=act),
        out_shape=jax.ShapeDtypeStruct((B, c2p, M), jnp.float32),
        grid=grid,
        in_specs=[
            pl.BlockSpec((None, K, tm), lambda b, n, m: (b, 0, m)),   # activations (bf16)
            pl.BlockSpec((tn, K), lambda b, n, m: (n, 0)),            # folded weight (bf16)
            pl.BlockSpec((tn, 1), lambda b, n, m: (n, 0)),            # folded bias (f32)
        ],
        out_specs=pl.BlockSpec((None, tn, tm), lambda b, n, m: (b, n, m)),
        compiler_params=pltpu.CompilerParams(
            dimension_semantics=("parallel", "parallel", "parallel")),
    )(a, w_pad, b_pad)


# ----------------------------------------------------------------------------
# Focus forward (NCHW in, NCHW out)
# ----------------------------------------------------------------------------
def focus_forward(x_nchw, params):
    B, C, H, W = x_nchw.shape
    assert H % 2 == 0 and W % 2 == 0  # TODO(synk): odd H/W (torch floor-slicing) unsupported
    Ho, Wo = H // 2, W // 2
    c2 = params["b_ref_f32"].shape[0]
    c2p = params["w"].shape[0]

    # Space-to-depth directly into the transposed-matmul operand layout (bf16):
    #   A[b, (wp*2 + hp)*C + c, ho*Wo + wo] = x[b, c, 2*ho + hp, 2*wo + wp]
    # matching the torch.cat order [(he,we), (ho,we), (he,wo), (ho,wo)].
    # Reshapes are free views; the transpose+cast is a single XLA pass.
    xr = x_nchw.reshape(B, C, Ho, 2, Wo, 2).astype(jnp.bfloat16)
    a = jnp.transpose(xr, (0, 5, 3, 1, 2, 4)).reshape(B, 4 * C, Ho * Wo)

    y = conv1x1_t(a, params["w"], params["b"], act="silu")   # (B, c2p, Ho*Wo) f32
    if c2p != c2:
        y = y[:, :c2, :]
    return y.reshape(B, c2, Ho, Wo)                          # channel-major: already NCHW


# ----------------------------------------------------------------------------
# Deterministic synthetic parameters: Conv2d(4*c1, c2, 1, bias=False) + BN folded
# ----------------------------------------------------------------------------
def init_params(key, c1, c2, eps=1e-5):
    k_w, k_g, k_b, k_m, k_v = jax.random.split(key, 5)
    cin = 4 * c1
    # PyTorch-layout 1x1 conv weight: (c2, 4*c1).
    w = jax.random.normal(k_w, (c2, cin), jnp.float32) / math.sqrt(cin)
    gamma = 1.0 + 0.1 * jax.random.normal(k_g, (c2,), jnp.float32)
    beta = 0.1 * jax.random.normal(k_b, (c2,), jnp.float32)
    rmean = 0.1 * jax.random.normal(k_m, (c2,), jnp.float32)
    rvar = 1.0 + 0.1 * jax.random.uniform(k_v, (c2,), jnp.float32)

    scale = gamma / jnp.sqrt(rvar + eps)
    w_fold = w * scale[:, None]                               # (c2, 4*c1)
    b_fold = beta - rmean * scale                             # (c2,)

    # Hoisted (done once): pad c2 to a multiple of 8 (sublane axis of the transposed
    # output), cast weight to bf16, keep bias f32 with a (c2p, 1) broadcast-ready shape.
    c2p = _round_up(c2, 8)
    w_pad = jnp.zeros((c2p, cin), jnp.float32).at[:c2, :].set(w_fold).astype(jnp.bfloat16)
    b_pad = jnp.zeros((c2p, 1), jnp.float32).at[:c2, 0].set(b_fold)

    return {
        "w": w_pad, "b": b_pad,
        "w_ref_f32": w_fold, "b_ref_f32": b_fold,   # f32 copies for the reference check
    }


if __name__ == "__main__":
    B, c1, c2, H, W = 2, 4, 32, 16, 16
    key = jax.random.PRNGKey(0)
    kp, kx = jax.random.split(key)
    params = init_params(kp, c1, c2)
    x = jax.random.normal(kx, (B, c1, H, W), jnp.float32)

    fwd = jax.jit(focus_forward)
    out = jax.block_until_ready(fwd(x, params))
    assert out.shape == (B, c2, H // 2, W // 2), out.shape
    assert bool(jnp.all(jnp.isfinite(out)))

    # Pure-JAX f32 reference with exact PyTorch Focus semantics.
    s2d = jnp.concatenate(
        [x[:, :, ::2, ::2], x[:, :, 1::2, ::2], x[:, :, ::2, 1::2], x[:, :, 1::2, 1::2]],
        axis=1)                                               # (B, 4*c1, Ho, Wo)
    pre = jnp.einsum("bkhw,ok->bohw", s2d, params["w_ref_f32"]) \
        + params["b_ref_f32"][None, :, None, None]
    ref = pre * jax.nn.sigmoid(pre)
    err = float(jnp.max(jnp.abs(out - ref)))
    assert err < 5e-2, f"max abs err {err}"       # bf16-operand / f32-accum tolerance

    print("KERNEL_OK")
</pallas_src>

<mosaic_0001>
module attributes {stable_mosaic.version = 11 : i64} {
  func.func @_focus_conv_kernel(%arg0: i32, %arg1: i32, %arg2: i32, %arg3: memref<1x16x64xbf16, #tpu.memory_space<vmem>>, %arg4: memref<32x16xbf16, #tpu.memory_space<vmem>>, %arg5: memref<32x1xf32, #tpu.memory_space<vmem>>, %arg6: memref<1x32x64xf32, #tpu.memory_space<vmem>>) attributes {dimension_semantics = [#tpu.dimension_semantics<parallel>, #tpu.dimension_semantics<parallel>, #tpu.dimension_semantics<parallel>], iteration_bounds = array<i64: 2, 1, 1>, scalar_prefetch = 0 : i64, scratch_operands = 0 : i64, tpu.core_type = #tpu.core_type<tc>, window_params = [{transform_indices = @transform_0, window_bounds = array<i64: 1, 16, 64>}, {transform_indices = @transform_1, window_bounds = array<i64: 32, 16>}, {transform_indices = @transform_2, window_bounds = array<i64: 32, 1>}, {transform_indices = @transform_3, window_bounds = array<i64: 1, 32, 64>}]} {
    %c0 = arith.constant 0 : index
    %c0_0 = arith.constant 0 : index
    %0 = vector.load %arg4[%c0, %c0_0] : memref<32x16xbf16, #tpu.memory_space<vmem>>, vector<32x16xbf16>
    %c0_1 = arith.constant 0 : index
    %c0_2 = arith.constant 0 : index
    %c0_3 = arith.constant 0 : index
    %1 = vector.load %arg3[%c0_1, %c0_2, %c0_3] : memref<1x16x64xbf16, #tpu.memory_space<vmem>>, vector<1x16x64xbf16>
    %2 = vector.shape_cast %1 : vector<1x16x64xbf16> to vector<16x64xbf16>
    %cst = arith.constant dense<0.000000e+00> : vector<32x64xf32>
    %3 = tpu.matmul %0, %2, %cst {dimension_numbers = #tpu.dot_dimension_numbers<[1], [0], [0], [1], [0, 0, 1, 1], [], []>} : vector<32x16xbf16>, vector<16x64xbf16>, vector<32x64xf32> -> vector<32x64xf32>
    %c0_4 = arith.constant 0 : index
    %c0_5 = arith.constant 0 : index
    %4 = vector.load %arg5[%c0_4, %c0_5] : memref<32x1xf32, #tpu.memory_space<vmem>>, vector<32x1xf32>
    %5 = vector.broadcast %4 : vector<32x1xf32> to vector<32x64xf32>
    %6 = arith.addf %3, %5 : vector<32x64xf32>
    %7 = arith.negf %6 : vector<32x64xf32>
    %8 = math.exp %7 : vector<32x64xf32>
    %cst_6 = arith.constant 1.000000e+00 : f32
    %9 = vector.broadcast %cst_6 : f32 to vector<32x64xf32>
    %10 = arith.addf %9, %8 : vector<32x64xf32>
    %11 = arith.divf %9, %10 : vector<32x64xf32>
    %12 = arith.mulf %6, %11 : vector<32x64xf32>
    %c0_7 = arith.constant 0 : index
    %c0_8 = arith.constant 0 : index
    %c0_9 = arith.constant 0 : index
    %13 = vector.load %arg6[%c0_7, %c0_8, %c0_9] : memref<1x32x64xf32, #tpu.memory_space<vmem>>, vector<1x32x64xf32>
    %14 = vector.shape_cast %13 : vector<1x32x64xf32> to vector<32x64xf32>
    %15 = vector.shape_cast %12 : vector<32x64xf32> to vector<1x32x64xf32>
    tpu.vector_store %arg6[%c0_7, %c0_8, %c0_9], %15 {strides = array<i32>} : memref<1x32x64xf32, #tpu.memory_space<vmem>>, vector<1x32x64xf32>,
    return
  }
  func.func @transform_0(%arg0: i32, %arg1: i32, %arg2: i32) -> (i32, i32, i32) {
    %c0_i32 = arith.constant 0 : i32
    %c0_i32_0 = arith.constant 0 : i32
    return %arg0, %c0_i32, %arg2 : i32, i32, i32
  }
  func.func @transform_1(%arg0: i32, %arg1: i32, %arg2: i32) -> (i32, i32) {
    %c0_i32 = arith.constant 0 : i32
    %c0_i32_0 = arith.constant 0 : i32
    return %arg1, %c0_i32 : i32, i32
  }
  func.func @transform_2(%arg0: i32, %arg1: i32, %arg2: i32) -> (i32, i32) {
    %c0_i32 = arith.constant 0 : i32
    %c0_i32_0 = arith.constant 0 : i32
    return %arg1, %c0_i32 : i32, i32
  }
  func.func @transform_3(%arg0: i32, %arg1: i32, %arg2: i32) -> (i32, i32, i32) {
    %c0_i32 = arith.constant 0 : i32
    return %arg0, %arg1, %arg2 : i32, i32, i32
  }
}

</mosaic_0001>

<bundles_post_ra>
// kernel: focus_forward.1
= control target key start
LH: loop header
LB: loop body
LE: loop exit
PB: predicated region body
PF: predicated region fallthrough
CT: control target
= control target key end

     0   :  { %s654_s12 = smov 0   ;;  %s656_s13 = smov 0   ;;  %s711_s0 = inlined_call_operand.vmem [shape: bf16[2,16,64], index: 0, kind: input, shape index: {}]   ;;  %s712_s1 = inlined_call_operand.vmem [shape: bf16[32,16], index: 1, kind: input, shape index: {}]   ;;  %s713_s2 = inlined_call_operand.vmem [shape: f32[32,1], index: 2, kind: input, shape index: {}]   ;;  %s714_s3 = inlined_call_operand.vmem [shape: f32[2,32,64], index: 3, kind: output, shape index: {}]  }
   0x1   :  { %s658_s14 = smov 0  }
   0x2 LB: > { %s32_s15 = sadd.s32 1, %s627_s13  ;;  %p536_p0 = scmp.ge.s32.totalorder %s631_s14, 1  ;;  %s631_s14 = sphi %s658_s14, %s13_s14   ;;  %s627_s13 = sphi %s656_s13, %s716_s13   ;;  %s623_s12 = sphi %s654_s12, %s715_s12  }
   0x3   : > { %p34_p1 = scmp.ge.s32.totalorder %s32_s15, 2  ;;  %p187_p2 = scmp.lt.s32.totalorder %s631_s14, 3 }
   0x5   : > { %s718_s15 = smov (%p34_p1, %s32_s15), 0  ;;  %p188_p3 = pnand %p536_p0, %p187_p2 }
   0x6   : > { %p231_p4 = scmp.lt.s32.totalorder (!%p188_p3), %s623_s12, 1 }
   0x7   : > { %191 = sbr.rel (%p188_p3) target bundleno = 256 (0x100), region = 32 }
   0xc   : > { %v591_v0 = vld [vmem:[%s712_s1] sm:$0xff]   ;;  %vm311_vm0 = vcmask 130048   ;;  %s720_s12 = smov (!%p231_p4, %s623_s12), 1  ;;  %v273_v1 = vld [vmem:[%s713_s2 + $0x10] sm:$0xff]  ;;  %v633_v3 = vmov 0   ;;  %v274_v4 = vld [vmem:[%s713_s2 + $0x18] sm:$0xff] }
   0xd   : > { %559 = vmatprep.mubr.msk.bf16.mxu0 %vm311_vm0, %v591_v0  ;;  %v271_v2 = vld [vmem:[%s713_s2] sm:$0xff]  ;;  %589 = vset.pattern.permute.xlu1 %v633_v3  ;;  %s552_s22 = sshll.u32 %s720_s12, 3  ;;  %v272_v5 = vld [vmem:[%s713_s2 + $0x8] sm:$0xff]  ;;  %s553_s5 = sshll.u32 %s720_s12, 5  ;;  %vm395_vm1 = vcmask 523264  }
   0xe   : > { %588 = vset.pattern.permute.xlu0 %v633_v3  ;;  %287 = vperm.xlu1 %589, %v273_v1   ;;  %s238_s25 = scalar_lea.vmem %s711_s0, %s552_s22  ;;  %v592_v7 = vld [vmem:[%s712_s1 + $0x8] sm:$0xff]   ;;  %s262_s8 = scalar_lea.vmem %s714_s3, %s553_s5 }
   0xf   : > { %277 = vperm.xlu0 %588, %v271_v2   ;;  %v590_v6 = vld [vmem:[%s238_s25] sm:$0xff]  }
  0x10   : > { %557 = vmatprep.subr.bf16.mxu0 %v590_v6 }
  0x11   : > { %558 = vmatpush3.bf16.msra.mxu0 %v590_v6 }
  0x12   : > { %292 = vperm.xlu1 %589, %v274_v4  }
  0x13   : > { %282 = vperm.xlu0 %588, %v272_v5  }
  0x14   : > { %560 = vmatmul.mubr.msk.bf16.vlgmr.msra.gmra.mxu0 %vm311_vm0, %v592_v7 }
  0x89   : > { %v288_v8 = vpop.permute.xlu1 %287 }
  0x8a   : > { %v278_v9 = vpop.permute.xlu0 %277 }
  0x8d   : > { %v293_v15 = vpop.permute.xlu1 %292 }
  0x8e   : > { %v283_v19 = vpop.permute.xlu0 %282 }
  0xd4   : > { %v561_v10 = vpop.f32.mrf.mxu0 }
  0xd5   : > { %v361_v11 = vadd.f32 %v561_v10, %v288_v8 }
  0xd6   : > { %v352_v12 = vpop.f32.mrf.mxu0 }
  0xd7   : > { %v548_v13 = vmul.f32 -1.442695, %v361_v11  ;;  %v353_v14 = vadd.f32 %v352_v12, %v278_v9 }
  0xd8   : > { %v562_v16 = vpop.f32.mrf.mxu0 }
  0xd9   : > { %593 = vpow2.f32 %v548_v13  ;;  %v546_v17 = vmul.f32 -1.442695, %v353_v14  ;;  %v364_v18 = vadd.f32 %v562_v16, %v293_v15 }
  0xda   : > { %v355_v20 = vpop.f32.mrf.mxu0 }
  0xdb   : > { %595 = vpow2.f32 %v546_v17  ;;  %v549_v21 = vmul.f32 -1.442695, %v364_v18  ;;  %v356_v22 = vadd.f32 %v355_v20, %v283_v19 }
  0xdd   : > { %597 = vpow2.f32 %v549_v21  ;;  %v547_v23 = vmul.f32 -1.442695, %v356_v22 }
  0xdf   : > { %599 = vpow2.f32 %v547_v23 }
  0xe6   : > { %v594_v24 = vpop.eup %593 }
  0xe7   : > { %v381_v25 = vadd.f32 1.0, %v594_v24 }
  0xe8   : > { %v596_v26 = vpop.eup %595 }
  0xe9   : > { %601 = vrcp.f32 %v381_v25  ;;  %v379_v27 = vadd.f32 1.0, %v596_v26 }
  0xea   : > { %v598_v28 = vpop.eup %597 }
  0xeb   : > { %603 = vrcp.f32 %v379_v27  ;;  %v382_v29 = vadd.f32 1.0, %v598_v28 }
  0xec   : > { %v600_v30 = vpop.eup %599 }
  0xed   : > { %605 = vrcp.f32 %v382_v29  ;;  %v380_v31 = vadd.f32 1.0, %v600_v30 }
  0xef   : > { %607 = vrcp.f32 %v380_v31 }
  0xf6   : > { %v602_v32 = vpop.eup %601 }
  0xf7   : > { %v393_v33 = vmul.f32 %v602_v32, %v361_v11 }
  0xf8   : > { %v604_v34 = vpop.eup %603 }
  0xf9   : > { %398 = vst.msk [vmem:[%s262_s8 + $0x10] sm:$0xff] %vm395_vm1, %v393_v33  ;;  %v391_v35 = vmul.f32 %v604_v34, %v353_v14 }
  0xfa   : > { %v606_v36 = vpop.eup %605 }
  0xfb   : > { %396 = vst.msk [vmem:[%s262_s8] sm:$0xff] %vm395_vm1, %v391_v35  ;;  %v394_v37 = vmul.f32 %v606_v36, %v364_v18 }
  0xfc   : > { %v608_v38 = vpop.eup %607 }
  0xfd   : > { %399 = vst.msk [vmem:[%s262_s8 + $0x18] sm:$0xff] %vm395_vm1, %v394_v37  ;;  %v392_v39 = vmul.f32 %v608_v38, %v356_v22 }
  0xff   : > { %397 = vst.msk [vmem:[%s262_s8 + $0x8] sm:$0xff] %vm395_vm1, %v392_v39 }
 0x100 PF: > { %s13_s14 = sadd.s32 1, %s631_s14   ;;  %s715_s12 = smov %s627_s13 }
 0x101   : > { %p10_p5 = scmp.ge.s32.totalorder %s13_s14, 4   ;;  %s716_s13 = smov %s718_s15 }
 0x103   :  { %12 = sbr.rel (!%p10_p5) target bundleno = 2 (0x2), region = 68 }

</bundles_post_ra>
